<compile_context>
chip_gen: v7x
topology: tpu7x:2x2x1
jax: 0.10.0
libtpu: 0.0.40
codegen_flags: <defaults>
</compile_context>

<pallas_src>
import jax
import jax.numpy as jnp
from jax.experimental import pallas as pl
from jax.experimental.pallas import tpu as pltpu


def sentiment_kernel(ids_ref, ewb_ref, out_ref):
    ids = ids_ref[...]                        # (T, TB) int32, batch on lanes
    ewb = ewb_ref[...]                        # (1, V)  f32, = (emb @ w + b) / T
    T, TB = ids.shape
    V = ewb.shape[1]

    # counts[v, b] = #{ t : ids[t, b] == v }, accumulated one sequence step at
    # a time so peak live data is (V, TB) — no (B, T, V) one-hot is built.
    vocab_iota = jax.lax.broadcasted_iota(jnp.int32, (V, TB), 0)   # hoisted
    counts = jnp.zeros((V, TB), dtype=jnp.float32)
    for t in range(T):                        # T is small & static -> unrolled
        counts = counts + (ids[t:t + 1, :] == vocab_iota).astype(jnp.float32)

    # Fused embedding-lookup + mean + Linear(16->1):
    #   logits[b] = sum_v ewb[v] * counts[v, b]          -> (1, TB), lane-dense
    logits = jnp.dot(ewb, counts, preferred_element_type=jnp.float32)
    probs = jax.nn.sigmoid(logits)

    # torch.round(..., decimals=4) (round-half-to-even, same as jnp.round)
    out_ref[...] = jnp.round(probs * 1e4) * 1e-4


def sentiment_forward(ids, emb_table, w, b):
    """ids: (B, T) int32; emb_table: (V, E); w: (E, 1); b: (1,)."""
    B, T = ids.shape
    V, E = emb_table.shape

    # Algebraic fusion, done once in plain XLA (tiny):
    #   mean_t(emb[id_t]) @ w + b  ==  sum_t ((emb @ w + b) / T)[id_t]
    ewb = ((emb_table @ w + b) * (1.0 / T)).reshape(1, V).astype(jnp.float32)

    # Put the batch axis on lanes inside the kernel (lane-dense output).
    ids_tb = ids.T.astype(jnp.int32)                                 # (T, B)

    # Batch tiling: full batch per tile while it fits one lane group,
    # otherwise 128-wide lane-dense tiles (pad the lane axis if needed).
    if B <= 128:
        TB, Bp = B, B
    else:
        TB = 128
        Bp = ((B + TB - 1) // TB) * TB
        if Bp != B:
            ids_tb = jnp.pad(ids_tb, ((0, 0), (0, Bp - B)))          # id 0 pad
    grid = (Bp // TB,)

    out = pl.pallas_call(
        sentiment_kernel,
        out_shape=jax.ShapeDtypeStruct((1, Bp), jnp.float32),
        grid=grid,
        in_specs=[
            pl.BlockSpec((T, TB), lambda i: (0, i)),   # ids tile (batch on lanes)
            pl.BlockSpec((1, V), lambda i: (0, 0)),    # fused per-token scores
        ],
        out_specs=pl.BlockSpec((1, TB), lambda i: (0, i)),
        compiler_params=pltpu.CompilerParams(
            dimension_semantics=("parallel",)),        # megacore on v7x
    )(ids_tb, ewb)
    return out[:, :B].reshape(B, 1)


if __name__ == "__main__":
    # Small, deterministic setup consistent with the module.
    vocab_size = 128
    emb_dim = 16
    batch, seq = 8, 8

    key = jax.random.PRNGKey(0)
    k_emb, k_w, k_b, k_ids = jax.random.split(key, 4)

    # Deterministic synthetic parameters (mimicking nn.Embedding / nn.Linear init).
    emb_table = jax.random.normal(k_emb, (vocab_size, emb_dim), dtype=jnp.float32)
    bound = 1.0 / (emb_dim ** 0.5)
    w = jax.random.uniform(k_w, (emb_dim, 1), minval=-bound, maxval=bound,
                           dtype=jnp.float32)
    b = jax.random.uniform(k_b, (1,), minval=-bound, maxval=bound,
                           dtype=jnp.float32)

    ids = jax.random.randint(k_ids, (batch, seq), 0, vocab_size, dtype=jnp.int32)

    out = sentiment_forward(ids, emb_table, w, b)
    out = jax.block_until_ready(out)

    # Pure-JAX reference in the original (unfused) order of operations.
    ref = jnp.round(
        jax.nn.sigmoid(jnp.mean(emb_table[ids], axis=1) @ w + b) * 1e4) * 1e-4

    # The fused kernel can differ from the unfused reference by at most one
    # 1e-4 rounding step when a probability lands on a rounding boundary.
    assert jnp.max(jnp.abs(out - ref)) <= 2e-4, (out, ref)

    print("KERNEL_OK")
</pallas_src>

<mosaic_0001>
module attributes {stable_mosaic.version = 11 : i64} {
  func.func @sentiment_kernel(%arg0: i32, %arg1: memref<8x8xi32, #tpu.memory_space<vmem>>, %arg2: memref<1x128xf32, #tpu.memory_space<vmem>>, %arg3: memref<1x8xf32, #tpu.memory_space<vmem>>) attributes {dimension_semantics = [#tpu.dimension_semantics<parallel>], iteration_bounds = array<i64: 1>, scalar_prefetch = 0 : i64, scratch_operands = 0 : i64, tpu.core_type = #tpu.core_type<tc>, window_params = [{transform_indices = @transform_0, window_bounds = array<i64: 8, 8>}, {pipeline_mode = #tpu.pipeline_mode<synchronous>, transform_indices = @transform_1, window_bounds = array<i64: 1, 128>}, {transform_indices = @transform_2, window_bounds = array<i64: 1, 8>}]} {
    %c0 = arith.constant 0 : index
    %c0_0 = arith.constant 0 : index
    %0 = vector.load %arg1[%c0, %c0_0] : memref<8x8xi32, #tpu.memory_space<vmem>>, vector<8x8xi32>
    %c0_1 = arith.constant 0 : index
    %c0_2 = arith.constant 0 : index
    %1 = vector.load %arg2[%c0_1, %c0_2] : memref<1x128xf32, #tpu.memory_space<vmem>>, vector<1x128xf32>
    %2 = tpu.iota {dimensions = array<i32: 0>} : vector<128x8xi32>
    %cst = arith.constant 0.000000e+00 : f32
    %3 = vector.broadcast %cst : f32 to vector<128x8xf32>
    %4 = vector.extract_strided_slice %0 {offsets = [0, 0], sizes = [1, 8], strides = [1, 1]} : vector<8x8xi32> to vector<1x8xi32>
    %5 = vector.broadcast %4 : vector<1x8xi32> to vector<128x8xi32>
    %6 = arith.cmpi eq, %5, %2 : vector<128x8xi32>
    %7 = arith.extui %6 : vector<128x8xi1> to vector<128x8xi32>
    %8 = arith.sitofp %7 : vector<128x8xi32> to vector<128x8xf32>
    %9 = arith.addf %3, %8 : vector<128x8xf32>
    %10 = vector.extract_strided_slice %0 {offsets = [1, 0], sizes = [1, 8], strides = [1, 1]} : vector<8x8xi32> to vector<1x8xi32>
    %11 = vector.broadcast %10 : vector<1x8xi32> to vector<128x8xi32>
    %12 = arith.cmpi eq, %11, %2 : vector<128x8xi32>
    %13 = arith.extui %12 : vector<128x8xi1> to vector<128x8xi32>
    %14 = arith.sitofp %13 : vector<128x8xi32> to vector<128x8xf32>
    %15 = arith.addf %9, %14 : vector<128x8xf32>
    %16 = vector.extract_strided_slice %0 {offsets = [2, 0], sizes = [1, 8], strides = [1, 1]} : vector<8x8xi32> to vector<1x8xi32>
    %17 = vector.broadcast %16 : vector<1x8xi32> to vector<128x8xi32>
    %18 = arith.cmpi eq, %17, %2 : vector<128x8xi32>
    %19 = arith.extui %18 : vector<128x8xi1> to vector<128x8xi32>
    %20 = arith.sitofp %19 : vector<128x8xi32> to vector<128x8xf32>
    %21 = arith.addf %15, %20 : vector<128x8xf32>
    %22 = vector.extract_strided_slice %0 {offsets = [3, 0], sizes = [1, 8], strides = [1, 1]} : vector<8x8xi32> to vector<1x8xi32>
    %23 = vector.broadcast %22 : vector<1x8xi32> to vector<128x8xi32>
    %24 = arith.cmpi eq, %23, %2 : vector<128x8xi32>
    %25 = arith.extui %24 : vector<128x8xi1> to vector<128x8xi32>
    %26 = arith.sitofp %25 : vector<128x8xi32> to vector<128x8xf32>
    %27 = arith.addf %21, %26 : vector<128x8xf32>
    %28 = vector.extract_strided_slice %0 {offsets = [4, 0], sizes = [1, 8], strides = [1, 1]} : vector<8x8xi32> to vector<1x8xi32>
    %29 = vector.broadcast %28 : vector<1x8xi32> to vector<128x8xi32>
    %30 = arith.cmpi eq, %29, %2 : vector<128x8xi32>
    %31 = arith.extui %30 : vector<128x8xi1> to vector<128x8xi32>
    %32 = arith.sitofp %31 : vector<128x8xi32> to vector<128x8xf32>
    %33 = arith.addf %27, %32 : vector<128x8xf32>
    %34 = vector.extract_strided_slice %0 {offsets = [5, 0], sizes = [1, 8], strides = [1, 1]} : vector<8x8xi32> to vector<1x8xi32>
    %35 = vector.broadcast %34 : vector<1x8xi32> to vector<128x8xi32>
    %36 = arith.cmpi eq, %35, %2 : vector<128x8xi32>
    %37 = arith.extui %36 : vector<128x8xi1> to vector<128x8xi32>
    %38 = arith.sitofp %37 : vector<128x8xi32> to vector<128x8xf32>
    %39 = arith.addf %33, %38 : vector<128x8xf32>
    %40 = vector.extract_strided_slice %0 {offsets = [6, 0], sizes = [1, 8], strides = [1, 1]} : vector<8x8xi32> to vector<1x8xi32>
    %41 = vector.broadcast %40 : vector<1x8xi32> to vector<128x8xi32>
    %42 = arith.cmpi eq, %41, %2 : vector<128x8xi32>
    %43 = arith.extui %42 : vector<128x8xi1> to vector<128x8xi32>
    %44 = arith.sitofp %43 : vector<128x8xi32> to vector<128x8xf32>
    %45 = arith.addf %39, %44 : vector<128x8xf32>
    %46 = vector.extract_strided_slice %0 {offsets = [7, 0], sizes = [1, 8], strides = [1, 1]} : vector<8x8xi32> to vector<1x8xi32>
    %47 = vector.broadcast %46 : vector<1x8xi32> to vector<128x8xi32>
    %48 = arith.cmpi eq, %47, %2 : vector<128x8xi32>
    %49 = arith.extui %48 : vector<128x8xi1> to vector<128x8xi32>
    %50 = arith.sitofp %49 : vector<128x8xi32> to vector<128x8xf32>
    %51 = arith.addf %45, %50 : vector<128x8xf32>
    %cst_3 = arith.constant dense<0.000000e+00> : vector<1x8xf32>
    %52 = tpu.matmul %1, %51, %cst_3 {dimension_numbers = #tpu.dot_dimension_numbers<[1], [0], [0], [1], [0, 0, 1, 1], [], []>} : vector<1x128xf32>, vector<128x8xf32>, vector<1x8xf32> -> vector<1x8xf32>
    %53 = arith.negf %52 : vector<1x8xf32>
    %54 = math.exp %53 : vector<1x8xf32>
    %cst_4 = arith.constant 1.000000e+00 : f32
    %55 = vector.broadcast %cst_4 : f32 to vector<1x8xf32>
    %56 = arith.addf %55, %54 : vector<1x8xf32>
    %57 = arith.divf %55, %56 : vector<1x8xf32>
    %cst_5 = arith.constant 1.000000e+04 : f32
    %58 = vector.broadcast %cst_5 : f32 to vector<1x8xf32>
    %59 = arith.mulf %57, %58 : vector<1x8xf32>
    %60 = math.roundeven %59 : vector<1x8xf32>
    %cst_6 = arith.constant 9.99999974E-5 : f32
    %61 = vector.broadcast %cst_6 : f32 to vector<1x8xf32>
    %62 = arith.mulf %60, %61 : vector<1x8xf32>
    %c0_7 = arith.constant 0 : index
    %c0_8 = arith.constant 0 : index
    %63 = vector.load %arg3[%c0_7, %c0_8] : memref<1x8xf32, #tpu.memory_space<vmem>>, vector<1x8xf32>
    tpu.vector_store %arg3[%c0_7, %c0_8], %62 {strides = array<i32>} : memref<1x8xf32, #tpu.memory_space<vmem>>, vector<1x8xf32>,
    return
  }
  func.func @transform_0(%arg0: i32) -> (i32, i32) {
    %c0_i32 = arith.constant 0 : i32
    %c0_i32_0 = arith.constant 0 : i32
    return %c0_i32, %arg0 : i32, i32
  }
  func.func @transform_1(%arg0: i32) -> (i32, i32) {
    %c0_i32 = arith.constant 0 : i32
    %c0_i32_0 = arith.constant 0 : i32
    %c0_i32_1 = arith.constant 0 : i32
    return %c0_i32, %c0_i32_0 : i32, i32
  }
  func.func @transform_2(%arg0: i32) -> (i32, i32) {
    %c0_i32 = arith.constant 0 : i32
    %c0_i32_0 = arith.constant 0 : i32
    return %c0_i32, %arg0 : i32, i32
  }
}

</mosaic_0001>

<bundles_post_ra>
// kernel: tpu_custom_call.1
= control target key start
LH: loop header
LB: loop body
LE: loop exit
PB: predicated region body
PF: predicated region fallthrough
CT: control target
= control target key end

     0   :  { %7 = vsyncpa [#allocation3], 0  ;;  %s1397_s0 = inlined_call_operand.hbm [shape: s32[8,8], index: 0, kind: input, shape index: {}]   ;;  %s1398_s1 = inlined_call_operand.vmem [shape: f32[1,128], index: 1, kind: input, shape index: {}]   ;;  %s1399_s2 = inlined_call_operand.hbm [shape: f32[1,8], index: 2, kind: output, shape index: {}]  }
   0x1   :  { %8 = vsyncpa [#allocation4], 0  ;;  %s946_s9 = smov [#allocation2]   ;;  %s898_s13 = scalar_lea.hbm %s1397_s0, 128 }
   0x2   :  { %s15_s10 = sshll.u32 %s946_s9, 4  ;;  %p899_p0 = scmp.ne.s32.totalorder %s1397_s0, %s898_s13  ;;  %s16_s10 = int_to_ptr.vmem [resolvable:$true] %s15_s10 }
   0x3   :  { %p902_p1 = scmp.lt.u32.totalorder %s898_s13, %s1397_s0 }
   0x5   :  { %p904_p2 = pnand %p902_p1, %p899_p0 }
   0x7   :  { %907 = shalt.err (!%p904_p2)
}
   0x8   :  { %s908_s18 = scalar_lea.vmem %s16_s10, 128  ;;  %p913_p4 = scmp.lt.s32.totalorder %s16_s10, %s16_s10 }
   0x9   :  { %p909_p3 = scmp.ne.s32.totalorder %s16_s10, %s908_s18  ;;  %p914_p5 = scmp.lt.s32.totalorder %s908_s18, %s908_s18 }
   0xb   :  { %p915_p6 = por %p914_p5, %p913_p4 }
   0xd   :  { %p916_p7 = pnand %p915_p6, %p909_p3 }
   0xf   :  { %919 = shalt.err (!%p916_p7)
}
  0x10   :  { %18 = dma.hbm_to_vmem [thread:$0]  %s1397_s0, 128, %s16_s10, [#allocation3]  }
  0x11   :  { %942 = dma.done.wait [#allocation3], 128  }
  0x12   :  { %943 = vsyncadd [#allocation3], 4294967168  ;;  %v26_v0 = vlaneseq  ;;  %v947_v1 = vmov 0.0|0.0   ;;  %vm948_vm0 = vmmov 0   ;;  %v949_v2 = vmov 0.0   ;;  %v24_v16 = vld [vmem:[#allocation2] sm:$0xff] }
  0x13   :  { %864 = vmatprep.subr.bf16.mxu0 %v947_v1  ;;  %861 = vmatprep.mubr.msk.f32.mxu0 %vm948_vm0, %v949_v2  ;;  %s950_s22 = smov [#allocation5]  }
  0x14   :  { %v980_v3 = vshrl.u32 %v26_v0, 7  ;;  %s674_s23 = sshll.u32 %s950_s22, 4  ;;  %s675_s23 = int_to_ptr.vmem [resolvable:$true] %s674_s23 }
  0x15   :  { %s920_s24 = scalar_lea.vmem %s675_s23, 16  ;;  %p925_p9 = scmp.lt.s32.totalorder %s675_s23, %s675_s23 }
  0x16   :  { %v45_v4 = vsub.s32 0, %v980_v3  ;;  %v113_v5 = vsub.s32 1, %v980_v3  ;;  %v181_v6 = vsub.s32 2, %v980_v3  ;;  %v249_v7 = vsub.s32 3, %v980_v3  ;;  %p921_p8 = scmp.ne.s32.totalorder %s675_s23, %s920_s24 }
  0x17   :  { %v317_v8 = vsub.s32 4, %v980_v3  ;;  %v385_v9 = vsub.s32 5, %v980_v3  ;;  %v453_v10 = vsub.s32 6, %v980_v3  ;;  %v521_v11 = vsub.s32 7, %v980_v3 }
  0x18   :  { %v28_v12 = vadd.s32 8, %v980_v3  ;;  %v992_v13 = vadd.s32 16, %v980_v3  ;;  %v995_v14 = vadd.s32 24, %v980_v3  ;;  %v998_v15 = vadd.s32 32, %v980_v3 }
  0x19   :  { %v1001_v17 = vadd.s32 40, %v980_v3  ;;  %v1004_v18 = vadd.s32 48, %v980_v3  ;;  %v1007_v19 = vadd.s32 56, %v980_v3  ;;  %v1010_v20 = vadd.s32 64, %v980_v3 }
  0x1a   :  { %v1012_v21 = vrot.slane %v24_v16, %v45_v4  ;;  %v1014_v22 = vrot.slane %v24_v16, %v113_v5  ;;  %v1016_v23 = vrot.slane %v24_v16, %v181_v6  ;;  %v1018_v24 = vrot.slane %v24_v16, %v249_v7 }
  0x1b   :  { %v1020_v25 = vrot.slane %v24_v16, %v317_v8  ;;  %v1022_v26 = vrot.slane %v24_v16, %v385_v9  ;;  %v1024_v27 = vrot.slane %v24_v16, %v453_v10  ;;  %v1026_v28 = vrot.slane %v24_v16, %v521_v11 }
  0x1c   :  { %vm47_vm1 = vcmp.eq.s32.totalorder %v1012_v21, %v980_v3  ;;  %vm48_vm2 = vcmp.eq.s32.totalorder %v1012_v21, %v28_v12  ;;  %vm115_vm3 = vcmp.eq.s32.totalorder %v1014_v22, %v980_v3  ;;  %vm116_vm4 = vcmp.eq.s32.totalorder %v1014_v22, %v28_v12 }
  0x1d   :  { %v683_v29 = vsel %vm47_vm1, 1.0, %v949_v2  ;;  %v684_v30 = vsel %vm48_vm2, 1.0, %v949_v2  ;;  %v699_v31 = vsel %vm115_vm3, 1.0, %v949_v2  ;;  %v700_v32 = vsel %vm116_vm4, 1.0, %v949_v2 }
  0x1e   :  { %v163_v33 = vadd.f32 %v699_v31, %v683_v29  ;;  %v164_v34 = vadd.f32 %v700_v32, %v684_v30  ;;  %vm183_vm5 = vcmp.eq.s32.totalorder %v1016_v23, %v980_v3  ;;  %vm184_vm6 = vcmp.eq.s32.totalorder %v1016_v23, %v28_v12 }
  0x1f   :  { %v715_v35 = vsel %vm183_vm5, 1.0, %v949_v2  ;;  %v716_v36 = vsel %vm184_vm6, 1.0, %v949_v2  ;;  %vm251_vm7 = vcmp.eq.s32.totalorder %v1018_v24, %v980_v3  ;;  %vm252_vm8 = vcmp.eq.s32.totalorder %v1018_v24, %v28_v12 }
  0x20   :  { %v231_v37 = vadd.f32 %v715_v35, %v163_v33  ;;  %v232_v38 = vadd.f32 %v716_v36, %v164_v34  ;;  %v731_v39 = vsel %vm251_vm7, 1.0, %v949_v2  ;;  %v732_v40 = vsel %vm252_vm8, 1.0, %v949_v2 }
  0x21   :  { %vm319_vm9 = vcmp.eq.s32.totalorder %v1020_v25, %v980_v3  ;;  %vm320_vm10 = vcmp.eq.s32.totalorder %v1020_v25, %v28_v12  ;;  %vm387_vm11 = vcmp.eq.s32.totalorder %v1022_v26, %v980_v3  ;;  %vm388_vm12 = vcmp.eq.s32.totalorder %v1022_v26, %v28_v12 }
  0x22   :  { %v299_v41 = vadd.f32 %v731_v39, %v231_v37  ;;  %v300_v42 = vadd.f32 %v732_v40, %v232_v38  ;;  %v747_v43 = vsel %vm319_vm9, 1.0, %v949_v2  ;;  %v748_v44 = vsel %vm320_vm10, 1.0, %v949_v2 }
  0x23   :  { %v763_v45 = vsel %vm387_vm11, 1.0, %v949_v2  ;;  %v764_v46 = vsel %vm388_vm12, 1.0, %v949_v2  ;;  %vm455_vm13 = vcmp.eq.s32.totalorder %v1024_v27, %v980_v3  ;;  %vm456_vm14 = vcmp.eq.s32.totalorder %v1024_v27, %v28_v12 }
  0x24   :  { %v367_v47 = vadd.f32 %v747_v43, %v299_v41  ;;  %v368_v48 = vadd.f32 %v748_v44, %v300_v42  ;;  %v779_v49 = vsel %vm455_vm13, 1.0, %v949_v2  ;;  %v780_v50 = vsel %vm456_vm14, 1.0, %v949_v2 }
  0x25   :  { %vm523_vm15 = vcmp.eq.s32.totalorder %v1026_v28, %v980_v3  ;;  %vm524_vm0 = vcmp.eq.s32.totalorder %v1026_v28, %v28_v12  ;;  %vm49_vm1 = vcmp.eq.s32.totalorder %v1012_v21, %v992_v13  ;;  %vm50_vm2 = vcmp.eq.s32.totalorder %v1012_v21, %v995_v14 }
  0x26   :  { %v435_v51 = vadd.f32 %v763_v45, %v367_v47  ;;  %v436_v52 = vadd.f32 %v764_v46, %v368_v48  ;;  %v795_v53 = vsel %vm523_vm15, 1.0, %v949_v2  ;;  %v796_v54 = vsel %vm524_vm0, 1.0, %v949_v2 }
  0x27   :  { %v685_v55 = vsel %vm49_vm1, 1.0, %v949_v2  ;;  %v686_v56 = vsel %vm50_vm2, 1.0, %v949_v2  ;;  %vm117_vm3 = vcmp.eq.s32.totalorder %v1014_v22, %v992_v13  ;;  %vm118_vm4 = vcmp.eq.s32.totalorder %v1014_v22, %v995_v14 }
  0x28   :  { %v503_v57 = vadd.f32 %v779_v49, %v435_v51  ;;  %v504_v58 = vadd.f32 %v780_v50, %v436_v52  ;;  %v701_v59 = vsel %vm117_vm3, 1.0, %v949_v2  ;;  %v702_v60 = vsel %vm118_vm4, 1.0, %v949_v2 }
  0x29   :  { %v165_v61 = vadd.f32 %v701_v59, %v685_v55  ;;  %v166_v62 = vadd.f32 %v702_v60, %v686_v56  ;;  %vm185_vm5 = vcmp.eq.s32.totalorder %v1016_v23, %v992_v13  ;;  %vm186_vm6 = vcmp.eq.s32.totalorder %v1016_v23, %v995_v14 }
  0x2a   :  { %v571_v63 = vadd.f32 %v795_v53, %v503_v57  ;;  %v572_v0 = vadd.f32 %v796_v54, %v504_v58  ;;  %v717_v4 = vsel %vm185_vm5, 1.0, %v949_v2  ;;  %v718_v5 = vsel %vm186_vm6, 1.0, %v949_v2 }
  0x2b   :  { %v233_v6 = vadd.f32 %v717_v4, %v165_v61  ;;  %v234_v7 = vadd.f32 %v718_v5, %v166_v62  ;;  %vm253_vm7 = vcmp.eq.s32.totalorder %v1018_v24, %v992_v13  ;;  %vm254_vm8 = vcmp.eq.s32.totalorder %v1018_v24, %v995_v14 }
  0x2c   :  { %v865_v8 = vpack.c.bf16 %v572_v0, %v571_v63  ;;  %v733_v9 = vsel %vm253_vm7, 1.0, %v949_v2  ;;  %v734_v10 = vsel %vm254_vm8, 1.0, %v949_v2  ;;  %vm321_vm9 = vcmp.eq.s32.totalorder %v1020_v25, %v992_v13 }
  0x2d   :  { %v301_v11 = vadd.f32 %v733_v9, %v233_v6  ;;  %v302_v12 = vadd.f32 %v734_v10, %v234_v7  ;;  %vm322_vm10 = vcmp.eq.s32.totalorder %v1020_v25, %v995_v14  ;;  %v749_v16 = vsel %vm321_vm9, 1.0, %v949_v2 }
  0x2e   :  { %866 = vmatpush3.bf16.msra.mxu0 %v865_v8  ;;  %v750_v29 = vsel %vm322_vm10, 1.0, %v949_v2  ;;  %vm389_vm11 = vcmp.eq.s32.totalorder %v1022_v26, %v992_v13  ;;  %vm390_vm12 = vcmp.eq.s32.totalorder %v1022_v26, %v995_v14  ;;  %vm457_vm13 = vcmp.eq.s32.totalorder %v1024_v27, %v992_v13 }
  0x2f   :  { %867 = vmatprep.subr.bf16.mxu0 %v947_v1  ;;  %v369_v30 = vadd.f32 %v749_v16, %v301_v11  ;;  %v370_v31 = vadd.f32 %v750_v29, %v302_v12  ;;  %v765_v32 = vsel %vm389_vm11, 1.0, %v949_v2  ;;  %v766_v33 = vsel %vm390_vm12, 1.0, %v949_v2 }
  0x30   :  { %vm458_vm14 = vcmp.eq.s32.totalorder %v1024_v27, %v995_v14  ;;  %v781_v34 = vsel %vm457_vm13, 1.0, %v949_v2  ;;  %vm525_vm15 = vcmp.eq.s32.totalorder %v1026_v28, %v992_v13  ;;  %vm526_vm0 = vcmp.eq.s32.totalorder %v1026_v28, %v995_v14 }
  0x31   :  { %v437_v35 = vadd.f32 %v765_v32, %v369_v30  ;;  %v438_v36 = vadd.f32 %v766_v33, %v370_v31  ;;  %v782_v37 = vsel %vm458_vm14, 1.0, %v949_v2  ;;  %v797_v38 = vsel %vm525_vm15, 1.0, %v949_v2 }
  0x32   :  { %v798_v39 = vsel %vm526_vm0, 1.0, %v949_v2  ;;  %vm51_vm1 = vcmp.eq.s32.totalorder %v1012_v21, %v998_v15  ;;  %vm52_vm2 = vcmp.eq.s32.totalorder %v1012_v21, %v1001_v17  ;;  %vm119_vm3 = vcmp.eq.s32.totalorder %v1014_v22, %v998_v15 }
  0x33   :  { %v505_v13 = vadd.f32 %v781_v34, %v437_v35  ;;  %v506_v40 = vadd.f32 %v782_v37, %v438_v36  ;;  %v687_v14 = vsel %vm51_vm1, 1.0, %v949_v2  ;;  %v688_v41 = vsel %vm52_vm2, 1.0, %v949_v2 }
  0x34   :  { %vm120_vm4 = vcmp.eq.s32.totalorder %v1014_v22, %v1001_v17  ;;  %v703_v42 = vsel %vm119_vm3, 1.0, %v949_v2  ;;  %vm187_vm5 = vcmp.eq.s32.totalorder %v1016_v23, %v998_v15  ;;  %vm188_vm6 = vcmp.eq.s32.totalorder %v1016_v23, %v1001_v17 }
  0x35   :  { %v573_v43 = vadd.f32 %v797_v38, %v505_v13  ;;  %v574_v44 = vadd.f32 %v798_v39, %v506_v40  ;;  %v704_v45 = vsel %vm120_vm4, 1.0, %v949_v2  ;;  %v167_v46 = vadd.f32 %v703_v42, %v687_v14 }
  0x36   :  { %v168_v47 = vadd.f32 %v704_v45, %v688_v41  ;;  %v719_v48 = vsel %vm187_vm5, 1.0, %v949_v2  ;;  %v720_v49 = vsel %vm188_vm6, 1.0, %v949_v2  ;;  %vm255_vm7 = vcmp.eq.s32.totalorder %v1018_v24, %v998_v15 }
  0x37   :  { %v868_v50 = vpack.c.bf16 %v574_v44, %v573_v43  ;;  %v235_v51 = vadd.f32 %v719_v48, %v167_v46  ;;  %vm256_vm8 = vcmp.eq.s32.totalorder %v1018_v24, %v1001_v17  ;;  %v735_v52 = vsel %vm255_vm7, 1.0, %v949_v2 }
  0x38   :  { %v236_v53 = vadd.f32 %v720_v49, %v168_v47  ;;  %v736_v54 = vsel %vm256_vm8, 1.0, %v949_v2  ;;  %vm323_vm9 = vcmp.eq.s32.totalorder %v1020_v25, %v998_v15  ;;  %vm324_vm10 = vcmp.eq.s32.totalorder %v1020_v25, %v1001_v17 }
  0x39   :  { %869 = vmatpush3.bf16.msra.mxu0 %v868_v50  ;;  %v303_v55 = vadd.f32 %v735_v52, %v235_v51  ;;  %v751_v56 = vsel %vm323_vm9, 1.0, %v949_v2  ;;  %v752_v57 = vsel %vm324_vm10, 1.0, %v949_v2  ;;  %vm391_vm11 = vcmp.eq.s32.totalorder %v1022_v26, %v998_v15 }
  0x3a   :  { %870 = vmatprep.subr.bf16.mxu0 %v947_v1  ;;  %v304_v58 = vadd.f32 %v736_v54, %v236_v53  ;;  %vm392_vm12 = vcmp.eq.s32.totalorder %v1022_v26, %v1001_v17  ;;  %v767_v59 = vsel %vm391_vm11, 1.0, %v949_v2  ;;  %vm459_vm13 = vcmp.eq.s32.totalorder %v1024_v27, %v998_v15 }
  0x3b   :  { %v371_v60 = vadd.f32 %v751_v56, %v303_v55  ;;  %v768_v61 = vsel %vm392_vm12, 1.0, %v949_v2  ;;  %vm460_vm14 = vcmp.eq.s32.totalorder %v1024_v27, %v1001_v17  ;;  %v783_v62 = vsel %vm459_vm13, 1.0, %v949_v2 }
  0x3c   :  { %v372_v63 = vadd.f32 %v752_v57, %v304_v58  ;;  %v784_v0 = vsel %vm460_vm14, 1.0, %v949_v2  ;;  %vm527_vm15 = vcmp.eq.s32.totalorder %v1026_v28, %v998_v15  ;;  %vm528_vm0 = vcmp.eq.s32.totalorder %v1026_v28, %v1001_v17 }
  0x3d   :  { %v439_v4 = vadd.f32 %v767_v59, %v371_v60  ;;  %v799_v5 = vsel %vm527_vm15, 1.0, %v949_v2  ;;  %v800_v6 = vsel %vm528_vm0, 1.0, %v949_v2  ;;  %vm53_vm1 = vcmp.eq.s32.totalorder %v1012_v21, %v1004_v18 }
  0x3e   :  { %v440_v7 = vadd.f32 %v768_v61, %v372_v63  ;;  %vm54_vm2 = vcmp.eq.s32.totalorder %v1012_v21, %v1007_v19  ;;  %v689_v8 = vsel %vm53_vm1, 1.0, %v949_v2  ;;  %vm121_vm3 = vcmp.eq.s32.totalorder %v1014_v22, %v1004_v18 }
  0x3f   :  { %v507_v15 = vadd.f32 %v783_v62, %v439_v4  ;;  %v690_v17 = vsel %vm54_vm2, 1.0, %v949_v2  ;;  %vm122_vm4 = vcmp.eq.s32.totalorder %v1014_v22, %v1007_v19  ;;  %v705_v9 = vsel %vm121_vm3, 1.0, %v949_v2 }
  0x40   :  { %v508_v10 = vadd.f32 %v784_v0, %v440_v7  ;;  %v706_v11 = vsel %vm122_vm4, 1.0, %v949_v2  ;;  %v169_v12 = vadd.f32 %v705_v9, %v689_v8  ;;  %vm189_vm5 = vcmp.eq.s32.totalorder %v1016_v23, %v1004_v18 }
  0x41   :  { %v575_v16 = vadd.f32 %v799_v5, %v507_v15  ;;  %v170_v29 = vadd.f32 %v706_v11, %v690_v17  ;;  %vm190_vm6 = vcmp.eq.s32.totalorder %v1016_v23, %v1007_v19  ;;  %v721_v30 = vsel %vm189_vm5, 1.0, %v949_v2 }
  0x42   :  { %v576_v31 = vadd.f32 %v800_v6, %v508_v10  ;;  %v722_v32 = vsel %vm190_vm6, 1.0, %v949_v2  ;;  %v237_v33 = vadd.f32 %v721_v30, %v169_v12  ;;  %vm257_vm7 = vcmp.eq.s32.totalorder %v1018_v24, %v1004_v18 }
  0x43   :  { %v238_v34 = vadd.f32 %v722_v32, %v170_v29  ;;  %vm258_vm8 = vcmp.eq.s32.totalorder %v1018_v24, %v1007_v19  ;;  %v737_v35 = vsel %vm257_vm7, 1.0, %v949_v2  ;;  %vm325_vm9 = vcmp.eq.s32.totalorder %v1020_v25, %v1004_v18 }
  0x44   :  { %v871_v36 = vpack.c.bf16 %v576_v31, %v575_v16  ;;  %v738_v37 = vsel %vm258_vm8, 1.0, %v949_v2  ;;  %v305_v38 = vadd.f32 %v737_v35, %v237_v33  ;;  %vm326_vm10 = vcmp.eq.s32.totalorder %v1020_v25, %v1007_v19 }
  0x45   :  { %v306_v39 = vadd.f32 %v738_v37, %v238_v34  ;;  %v753_v13 = vsel %vm325_vm9, 1.0, %v949_v2  ;;  %v754_v40 = vsel %vm326_vm10, 1.0, %v949_v2  ;;  %vm393_vm11 = vcmp.eq.s32.totalorder %v1022_v26, %v1004_v18 }
  0x46   :  { %872 = vmatpush3.bf16.msra.mxu0 %v871_v36  ;;  %v373_v14 = vadd.f32 %v753_v13, %v305_v38  ;;  %vm394_vm12 = vcmp.eq.s32.totalorder %v1022_v26, %v1007_v19  ;;  %v769_v41 = vsel %vm393_vm11, 1.0, %v949_v2  ;;  %vm461_vm13 = vcmp.eq.s32.totalorder %v1024_v27, %v1004_v18 }
  0x47   :  { %873 = vmatprep.subr.bf16.mxu0 %v947_v1  ;;  %v374_v42 = vadd.f32 %v754_v40, %v306_v39  ;;  %v770_v43 = vsel %vm394_vm12, 1.0, %v949_v2  ;;  %vm462_vm14 = vcmp.eq.s32.totalorder %v1024_v27, %v1007_v19  ;;  %v785_v44 = vsel %vm461_vm13, 1.0, %v949_v2 }
  0x48   :  { %v441_v45 = vadd.f32 %v769_v41, %v373_v14  ;;  %v786_v46 = vsel %vm462_vm14, 1.0, %v949_v2  ;;  %vm529_vm15 = vcmp.eq.s32.totalorder %v1026_v28, %v1004_v18  ;;  %vm530_vm0 = vcmp.eq.s32.totalorder %v1026_v28, %v1007_v19 }
  0x49   :  { %v442_v47 = vadd.f32 %v770_v43, %v374_v42  ;;  %v801_v48 = vsel %vm529_vm15, 1.0, %v949_v2  ;;  %v802_v49 = vsel %vm530_vm0, 1.0, %v949_v2  ;;  %v36_v50 = vadd.s32 72, %v980_v3 }
  0x4a   :  { %v509_v51 = vadd.f32 %v785_v44, %v441_v45  ;;  %vm55_vm1 = vcmp.eq.s32.totalorder %v1012_v21, %v1010_v20  ;;  %vm123_vm2 = vcmp.eq.s32.totalorder %v1014_v22, %v1010_v20  ;;  %vm191_vm3 = vcmp.eq.s32.totalorder %v1016_v23, %v1010_v20 }
  0x4b   :  { %v510_v18 = vadd.f32 %v786_v46, %v442_v47  ;;  %vm56_vm4 = vcmp.eq.s32.totalorder %v1012_v21, %v36_v50  ;;  %v691_v19 = vsel %vm55_vm1, 1.0, %v949_v2  ;;  %vm124_vm5 = vcmp.eq.s32.totalorder %v1014_v22, %v36_v50 }
  0x4c   :  { %v577_v52 = vadd.f32 %v801_v48, %v509_v51  ;;  %v692_v53 = vsel %vm56_vm4, 1.0, %v949_v2  ;;  %v707_v54 = vsel %vm123_vm2, 1.0, %v949_v2  ;;  %v708_v55 = vsel %vm124_vm5, 1.0, %v949_v2 }
  0x4d   :  { %v578_v56 = vadd.f32 %v802_v49, %v510_v18  ;;  %v171_v57 = vadd.f32 %v707_v54, %v691_v19  ;;  %v172_v58 = vadd.f32 %v708_v55, %v692_v53  ;;  %vm192_vm6 = vcmp.eq.s32.totalorder %v1016_v23, %v36_v50 }
  0x4e   :  { %v723_v59 = vsel %vm191_vm3, 1.0, %v949_v2  ;;  %v724_v60 = vsel %vm192_vm6, 1.0, %v949_v2  ;;  %vm259_vm7 = vcmp.eq.s32.totalorder %v1018_v24, %v1010_v20  ;;  %vm260_vm8 = vcmp.eq.s32.totalorder %v1018_v24, %v36_v50 }
  0x4f   :  { %v874_v61 = vpack.c.bf16 %v578_v56, %v577_v52  ;;  %v239_v62 = vadd.f32 %v723_v59, %v171_v57  ;;  %v240_v63 = vadd.f32 %v724_v60, %v172_v58  ;;  %v739_v0 = vsel %vm259_vm7, 1.0, %v949_v2 }
  0x50   :  { %v740_v4 = vsel %vm260_vm8, 1.0, %v949_v2  ;;  %vm327_vm9 = vcmp.eq.s32.totalorder %v1020_v25, %v1010_v20  ;;  %vm328_vm10 = vcmp.eq.s32.totalorder %v1020_v25, %v36_v50  ;;  %vm395_vm11 = vcmp.eq.s32.totalorder %v1022_v26, %v1010_v20 }
  0x51   :  { %875 = vmatpush3.bf16.msra.mxu0 %v874_v61  ;;  %v307_v5 = vadd.f32 %v739_v0, %v239_v62  ;;  %v308_v6 = vadd.f32 %v740_v4, %v240_v63  ;;  %v755_v7 = vsel %vm327_vm9, 1.0, %v949_v2  ;;  %v756_v8 = vsel %vm328_vm10, 1.0, %v949_v2 }
  0x52   :  { %876 = vmatprep.subr.bf16.mxu0 %v947_v1  ;;  %vm396_vm12 = vcmp.eq.s32.totalorder %v1022_v26, %v36_v50  ;;  %v771_v15 = vsel %vm395_vm11, 1.0, %v949_v2  ;;  %vm463_vm13 = vcmp.eq.s32.totalorder %v1024_v27, %v1010_v20  ;;  %vm464_vm14 = vcmp.eq.s32.totalorder %v1024_v27, %v36_v50 }
  0x53   :  { %v375_v17 = vadd.f32 %v755_v7, %v307_v5  ;;  %v376_v9 = vadd.f32 %v756_v8, %v308_v6  ;;  %v772_v10 = vsel %vm396_vm12, 1.0, %v949_v2  ;;  %v787_v11 = vsel %vm463_vm13, 1.0, %v949_v2 }
  0x54   :  { %v788_v12 = vsel %vm464_vm14, 1.0, %v949_v2  ;;  %vm531_vm15 = vcmp.eq.s32.totalorder %v1026_v28, %v1010_v20  ;;  %vm532_vm0 = vcmp.eq.s32.totalorder %v1026_v28, %v36_v50  ;;  %v37_v16 = vadd.s32 80, %v980_v3 }
  0x55   :  { %v443_v29 = vadd.f32 %v771_v15, %v375_v17  ;;  %v444_v30 = vadd.f32 %v772_v10, %v376_v9  ;;  %v803_v31 = vsel %vm531_vm15, 1.0, %v949_v2  ;;  %v804_v32 = vsel %vm532_vm0, 1.0, %v949_v2 }
  0x56   :  { %v38_v33 = vadd.s32 88, %v980_v3  ;;  %vm57_vm1 = vcmp.eq.s32.totalorder %v1012_v21, %v37_v16  ;;  %vm125_vm2 = vcmp.eq.s32.totalorder %v1014_v22, %v37_v16  ;;  %vm193_vm3 = vcmp.eq.s32.totalorder %v1016_v23, %v37_v16 }
  0x57   :  { %v511_v34 = vadd.f32 %v787_v11, %v443_v29  ;;  %v512_v20 = vadd.f32 %v788_v12, %v444_v30  ;;  %v693_v35 = vsel %vm57_vm1, 1.0, %v949_v2  ;;  %v709_v36 = vsel %vm125_vm2, 1.0, %v949_v2 }
  0x58   :  { %vm58_vm4 = vcmp.eq.s32.totalorder %v1012_v21, %v38_v33  ;;  %vm126_vm5 = vcmp.eq.s32.totalorder %v1014_v22, %v38_v33  ;;  %v173_v37 = vadd.f32 %v709_v36, %v693_v35  ;;  %vm194_vm6 = vcmp.eq.s32.totalorder %v1016_v23, %v38_v33 }
  0x59   :  { %v579_v38 = vadd.f32 %v803_v31, %v511_v34  ;;  %v580_v39 = vadd.f32 %v804_v32, %v512_v20  ;;  %v694_v13 = vsel %vm58_vm4, 1.0, %v949_v2  ;;  %v710_v40 = vsel %vm126_vm5, 1.0, %v949_v2 }
  0x5a   :  { %v174_v14 = vadd.f32 %v710_v40, %v694_v13  ;;  %v725_v41 = vsel %vm193_vm3, 1.0, %v949_v2  ;;  %v726_v42 = vsel %vm194_vm6, 1.0, %v949_v2  ;;  %vm261_vm7 = vcmp.eq.s32.totalorder %v1018_v24, %v37_v16 }
  0x5b   :  { %v877_v43 = vpack.c.bf16 %v580_v39, %v579_v38  ;;  %v241_v44 = vadd.f32 %v725_v41, %v173_v37  ;;  %vm262_vm8 = vcmp.eq.s32.totalorder %v1018_v24, %v38_v33  ;;  %v741_v45 = vsel %vm261_vm7, 1.0, %v949_v2 }
  0x5c   :  { %v242_v46 = vadd.f32 %v726_v42, %v174_v14  ;;  %v742_v47 = vsel %vm262_vm8, 1.0, %v949_v2  ;;  %vm329_vm9 = vcmp.eq.s32.totalorder %v1020_v25, %v37_v16  ;;  %vm330_vm10 = vcmp.eq.s32.totalorder %v1020_v25, %v38_v33 }
  0x5d   :  { %878 = vmatpush3.bf16.msra.mxu0 %v877_v43  ;;  %v309_v48 = vadd.f32 %v741_v45, %v241_v44  ;;  %v757_v49 = vsel %vm329_vm9, 1.0, %v949_v2  ;;  %v758_v50 = vsel %vm330_vm10, 1.0, %v949_v2  ;;  %vm397_vm11 = vcmp.eq.s32.totalorder %v1022_v26, %v37_v16 }
  0x5e   :  { %879 = vmatprep.subr.bf16.mxu0 %v947_v1  ;;  %v310_v51 = vadd.f32 %v742_v47, %v242_v46  ;;  %vm398_vm12 = vcmp.eq.s32.totalorder %v1022_v26, %v38_v33  ;;  %v773_v18 = vsel %vm397_vm11, 1.0, %v949_v2  ;;  %vm465_vm13 = vcmp.eq.s32.totalorder %v1024_v27, %v37_v16 }
  0x5f   :  { %v377_v19 = vadd.f32 %v757_v49, %v309_v48  ;;  %v774_v52 = vsel %vm398_vm12, 1.0, %v949_v2  ;;  %vm466_vm14 = vcmp.eq.s32.totalorder %v1024_v27, %v38_v33  ;;  %v789_v53 = vsel %vm465_vm13, 1.0, %v949_v2 }
  0x60   :  { %v378_v54 = vadd.f32 %v758_v50, %v310_v51  ;;  %v790_v55 = vsel %vm466_vm14, 1.0, %v949_v2  ;;  %vm533_vm15 = vcmp.eq.s32.totalorder %v1026_v28, %v37_v16  ;;  %vm534_vm0 = vcmp.eq.s32.totalorder %v1026_v28, %v38_v33 }
  0x61   :  { %v445_v56 = vadd.f32 %v773_v18, %v377_v19  ;;  %v805_v57 = vsel %vm533_vm15, 1.0, %v949_v2  ;;  %v806_v58 = vsel %vm534_vm0, 1.0, %v949_v2  ;;  %v39_v59 = vadd.s32 96, %v980_v3 }
  0x62   :  { %v446_v60 = vadd.f32 %v774_v52, %v378_v54  ;;  %v40_v61 = vadd.s32 104, %v980_v3  ;;  %v1295_v62 = vadd.s32 112, %v980_v3  ;;  %v1298_v63 = vadd.s32 120, %v980_v3 }
  0x63   :  { %v513_v0 = vadd.f32 %v789_v53, %v445_v56  ;;  %vm59_vm1 = vcmp.eq.s32.totalorder %v1012_v21, %v39_v59  ;;  %vm127_vm2 = vcmp.eq.s32.totalorder %v1014_v22, %v39_v59  ;;  %vm195_vm3 = vcmp.eq.s32.totalorder %v1016_v23, %v39_v59 }
  0x64   :  { %v514_v4 = vadd.f32 %v790_v55, %v446_v60  ;;  %vm60_vm4 = vcmp.eq.s32.totalorder %v1012_v21, %v40_v61  ;;  %v695_v5 = vsel %vm59_vm1, 1.0, %v949_v2  ;;  %vm128_vm5 = vcmp.eq.s32.totalorder %v1014_v22, %v40_v61 }
  0x65   :  { %v581_v6 = vadd.f32 %v805_v57, %v513_v0  ;;  %v696_v7 = vsel %vm60_vm4, 1.0, %v949_v2  ;;  %v711_v3 = vsel %vm127_vm2, 1.0, %v949_v2  ;;  %v712_v8 = vsel %vm128_vm5, 1.0, %v949_v2 }
  0x66   :  { %v582_v15 = vadd.f32 %v806_v58, %v514_v4  ;;  %v175_v17 = vadd.f32 %v711_v3, %v695_v5  ;;  %v176_v9 = vadd.f32 %v712_v8, %v696_v7  ;;  %vm196_vm6 = vcmp.eq.s32.totalorder %v1016_v23, %v40_v61 }
  0x67   :  { %v727_v10 = vsel %vm195_vm3, 1.0, %v949_v2  ;;  %v728_v11 = vsel %vm196_vm6, 1.0, %v949_v2  ;;  %vm263_vm7 = vcmp.eq.s32.totalorder %v1018_v24, %v39_v59  ;;  %vm264_vm8 = vcmp.eq.s32.totalorder %v1018_v24, %v40_v61 }
  0x68   :  { %v880_v12 = vpack.c.bf16 %v582_v15, %v581_v6  ;;  %v243_v16 = vadd.f32 %v727_v10, %v175_v17  ;;  %v244_v29 = vadd.f32 %v728_v11, %v176_v9  ;;  %v743_v30 = vsel %vm263_vm7, 1.0, %v949_v2 }
  0x69   :  { %v744_v31 = vsel %vm264_vm8, 1.0, %v949_v2  ;;  %vm331_vm9 = vcmp.eq.s32.totalorder %v1020_v25, %v39_v59  ;;  %vm332_vm10 = vcmp.eq.s32.totalorder %v1020_v25, %v40_v61  ;;  %vm399_vm11 = vcmp.eq.s32.totalorder %v1022_v26, %v39_v59 }
  0x6a   :  { %881 = vmatpush3.bf16.msra.mxu0 %v880_v12  ;;  %v311_v32 = vadd.f32 %v743_v30, %v243_v16  ;;  %v312_v33 = vadd.f32 %v744_v31, %v244_v29  ;;  %v759_v34 = vsel %vm331_vm9, 1.0, %v949_v2  ;;  %v760_v20 = vsel %vm332_vm10, 1.0, %v949_v2 }
  0x6b   :  { %882 = vmatprep.subr.bf16.mxu0 %v947_v1  ;;  %vm400_vm12 = vcmp.eq.s32.totalorder %v1022_v26, %v40_v61  ;;  %v775_v35 = vsel %vm399_vm11, 1.0, %v949_v2  ;;  %vm467_vm13 = vcmp.eq.s32.totalorder %v1024_v27, %v39_v59  ;;  %vm468_vm14 = vcmp.eq.s32.totalorder %v1024_v27, %v40_v61 }
  0x6c   :  { %v379_v36 = vadd.f32 %v759_v34, %v311_v32  ;;  %v380_v37 = vadd.f32 %v760_v20, %v312_v33  ;;  %v776_v38 = vsel %vm400_vm12, 1.0, %v949_v2  ;;  %v791_v39 = vsel %vm467_vm13, 1.0, %v949_v2 }
  0x6d   :  { %v792_v13 = vsel %vm468_vm14, 1.0, %v949_v2  ;;  %vm535_vm15 = vcmp.eq.s32.totalorder %v1026_v28, %v39_v59  ;;  %vm536_vm0 = vcmp.eq.s32.totalorder %v1026_v28, %v40_v61  ;;  %vm61_vm1 = vcmp.eq.s32.totalorder %v1012_v21, %v1295_v62 }
  0x6e   :  { %v447_v40 = vadd.f32 %v775_v35, %v379_v36  ;;  %v448_v14 = vadd.f32 %v776_v38, %v380_v37  ;;  %v807_v41 = vsel %vm535_vm15, 1.0, %v949_v2  ;;  %v808_v42 = vsel %vm536_vm0, 1.0, %v949_v2 }
  0x6f   :  { %vm62_vm2 = vcmp.eq.s32.totalorder %v1012_v21, %v1298_v63  ;;  %v697_v43 = vsel %vm61_vm1, 1.0, %v949_v2  ;;  %vm129_vm3 = vcmp.eq.s32.totalorder %v1014_v22, %v1295_v62  ;;  %vm130_vm4 = vcmp.eq.s32.totalorder %v1014_v22, %v1298_v63 }
  0x70   :  { %v515_v44 = vadd.f32 %v791_v39, %v447_v40  ;;  %v516_v45 = vadd.f32 %v792_v13, %v448_v14  ;;  %v698_v46 = vsel %vm62_vm2, 1.0, %v949_v2  ;;  %v713_v47 = vsel %vm129_vm3, 1.0, %v949_v2 }
  0x71   :  { %v714_v48 = vsel %vm130_vm4, 1.0, %v949_v2  ;;  %v177_v49 = vadd.f32 %v713_v47, %v697_v43  ;;  %vm197_vm5 = vcmp.eq.s32.totalorder %v1016_v23, %v1295_v62  ;;  %vm198_vm6 = vcmp.eq.s32.totalorder %v1016_v23, %v1298_v63 }
  0x72   :  { %v583_v21 = vadd.f32 %v807_v41, %v515_v44  ;;  %v584_v50 = vadd.f32 %v808_v42, %v516_v45  ;;  %v178_v51 = vadd.f32 %v714_v48, %v698_v46  ;;  %v729_v22 = vsel %vm197_vm5, 1.0, %v949_v2 }
  0x73   :  { %v730_v18 = vsel %vm198_vm6, 1.0, %v949_v2  ;;  %v245_v19 = vadd.f32 %v729_v22, %v177_v49  ;;  %vm265_vm7 = vcmp.eq.s32.totalorder %v1018_v24, %v1295_v62  ;;  %vm266_vm8 = vcmp.eq.s32.totalorder %v1018_v24, %v1298_v63 }
  0x74   :  { %v883_v52 = vpack.c.bf16 %v584_v50, %v583_v21  ;;  %v246_v53 = vadd.f32 %v730_v18, %v178_v51  ;;  %v745_v54 = vsel %vm265_vm7, 1.0, %v949_v2  ;;  %v746_v23 = vsel %vm266_vm8, 1.0, %v949_v2 }
  0x75   :  { %v313_v55 = vadd.f32 %v745_v54, %v245_v19  ;;  %vm333_vm9 = vcmp.eq.s32.totalorder %v1020_v25, %v1295_v62  ;;  %vm334_vm10 = vcmp.eq.s32.totalorder %v1020_v25, %v1298_v63  ;;  %vm401_vm11 = vcmp.eq.s32.totalorder %v1022_v26, %v1295_v62 }
  0x76   :  { %884 = vmatpush3.bf16.msra.mxu0 %v883_v52  ;;  %v314_v56 = vadd.f32 %v746_v23, %v246_v53  ;;  %v761_v24 = vsel %vm333_vm9, 1.0, %v949_v2  ;;  %v762_v57 = vsel %vm334_vm10, 1.0, %v949_v2  ;;  %vm402_vm12 = vcmp.eq.s32.totalorder %v1022_v26, %v1298_v63 }
  0x77   :  { %885 = vmatprep.subr.bf16.mxu0 %v947_v1  ;;  %v381_v58 = vadd.f32 %v761_v24, %v313_v55  ;;  %v777_v59 = vsel %vm401_vm11, 1.0, %v949_v2  ;;  %v778_v60 = vsel %vm402_vm12, 1.0, %v949_v2  ;;  %vm469_vm13 = vcmp.eq.s32.totalorder %v1024_v27, %v1295_v62 }
  0x78   :  { %v382_v25 = vadd.f32 %v762_v57, %v314_v56  ;;  %vm470_vm14 = vcmp.eq.s32.totalorder %v1024_v27, %v1298_v63  ;;  %v793_v61 = vsel %vm469_vm13, 1.0, %v949_v2  ;;  %vm537_vm15 = vcmp.eq.s32.totalorder %v1026_v28, %v1295_v62  ;;  %v25_v62 = vld [vmem:[%s1398_s1] sm:$0x1]  ;;  %s924_s1 = scalar_lea.vmem %s675_s23, 32 }
  0x79   :  { %v449_v26 = vadd.f32 %v777_v59, %v381_v58  ;;  %v794_v1 = vsel %vm470_vm14, 1.0, %v949_v2  ;;  %vm538_vm0 = vcmp.eq.s32.totalorder %v1026_v28, %v1298_v63  ;;  %v809_v4 = vsel %vm537_vm15, 1.0, %v949_v2  ;;  %p926_p10 = scmp.lt.s32.totalorder %s924_s1, %s920_s24 }
  0x7a   :  { %v450_v0 = vadd.f32 %v778_v60, %v382_v25  ;;  %v810_v6 = vsel %vm538_vm0, 1.0, %v949_v2  ;;  %vm666_vm1 = vcmask 57344  }
  0x7b   :  { %v517_v5 = vadd.f32 %v793_v61, %v449_v26  ;;  %p927_p11 = por %p926_p10, %p925_p9 }
  0x7c   :  { %v518_v7 = vadd.f32 %v794_v1, %v450_v0 }
  0x7d   :  { %v585_v3 = vadd.f32 %v809_v4, %v517_v5  ;;  %p928_p12 = pnand %p927_p11, %p921_p8 }
  0x7e   :  { %v586_v27 = vadd.f32 %v810_v6, %v518_v7 }
  0x80   :  { %v886_v8 = vpack.c.bf16 %v586_v27, %v585_v3 }
  0x82   :  { %887 = vmatpush3.bf16.msra.mxu0 %v886_v8 }
  0x85   :  { %862 = vmatmul.mubr.f32.vlgmr.msra.gmra.mrb[0].mxu0 %v25_v62 }
 0x158   :  { %v653_v15 = vpop.f32.mrb[0].mxu0 }
 0x159   :  { %v811_v17 = vmul.f32 -1.442695, %v653_v15  ;;  %v863_v9 = vpop.f32.mrb[1].mxu0 }
 0x15b   :  { %894 = vpow2.f32 %v811_v17 }
 0x165   :  { %v895_v28 = vpop.eup %894 }
 0x166   :  { %v660_v63 = vadd.f32 1.0, %v895_v28 }
 0x168   :  { %896 = vrcp.f32 %v660_v63 }
 0x172   :  { %v897_v10 = vpop.eup %896 }
 0x173   :  { %v663_v11 = vmul.f32 10000.0, %v897_v10 }
 0x175   :  { %v888_v2 = vround.rtne.f32 %v663_v11 }
 0x177   :  { %v665_v12 = vmul.f32 0.0001, %v888_v2 }
 0x179   :  { %667 = vst.msk [vmem:[#allocation5] sm:$0x1] %vm666_vm1, %v665_v12 }
 0x17a   :  { %931 = shalt.err (!%p928_p12)
}
 0x17b   :  { %s932_s27 = scalar_lea.hbm %s1399_s2, 16 }
 0x17c   :  { %p933_p13 = scmp.ne.s32.totalorder %s1399_s2, %s932_s27  ;;  %p936_p0 = scmp.lt.u32.totalorder %s932_s27, %s1399_s2 }
 0x17e   :  { %p938_p1 = pnand %p936_p0, %p933_p13 }
 0x180   :  { %941 = shalt.err (!%p938_p1)
}
 0x181   :  { %677 = dma.vmem_to_hbm [thread:$0]  %s675_s23, 16, %s1399_s2, [#allocation4]  }
 0x182   :  { %944 = dma.done.wait [#allocation4], 16  }
 0x183   :  { %945 = vsyncadd [#allocation4], 4294967280 }
 0x184   :  { %681 = vsyncpa [#allocation3], 1 }
 0x185   :  { %682 = vsyncpa [#allocation4], 1 }

</bundles_post_ra>
